<compile_context>
chip_gen: v7x
topology: tpu7x:2x2x1
jax: 0.10.0
libtpu: 0.0.40
codegen_flags: <defaults>
</compile_context>

<pallas_src>
import jax
import jax.numpy as jnp
from jax import lax
from jax.experimental import pallas as pl
from jax.experimental.pallas import tpu as pltpu


def _round_up(x, m):
    return (x + m - 1) // m * m


def _vmem_budget_bytes():
    """Usable VMEM budget (bytes), generation-aware with a safe fallback."""
    cap = 64 * 1024 * 1024  # conservative fallback: v7x physical VMEM per TC
    try:
        cap = int(pltpu.get_tpu_info().vmem_capacity_bytes)
    except Exception:
        pass
    return int(cap * 3 // 4)  # leave headroom for compiler-internal scratch


def _pick_tn(n_pad8, tb, w, budget):
    """Largest N-tile (multiple of 8) whose working set fits the budget."""
    # per N row: weight tile (double-buffered f32) + onehot (f32) + iota (i32)
    per_row = 2 * w * 4 + tb * 8
    # fixed: out blocks (x2) + f32 accumulator + idx blocks (x2, lane-padded)
    fixed = 3 * tb * w * 4 + 2 * tb * 128 * 4
    tn = (budget - fixed) // per_row
    tn = max(8, (tn // 8) * 8)
    return min(tn, n_pad8)


# ---------------------------------------------------------------------------
# Kernels
# ---------------------------------------------------------------------------

def _gather_resident_kernel(idx_ref, w_ref, out_ref):
    # idx_ref: (TB, 1)     int32 — this chunk's lookup indices (sublane axis)
    # w_ref:   (N_pad, W)  f32   — full precomputed weight table, VMEM-resident
    # out_ref: (TB, W)     f32
    tb = out_ref.shape[0]
    n_pad = w_ref.shape[0]
    col_ids = lax.broadcasted_iota(jnp.int32, (tb, n_pad), 1)          # (TB, N_pad)
    onehot = jnp.where(idx_ref[...] == col_ids,
                       jnp.float32(1.0), jnp.float32(0.0))             # (TB, N_pad)
    # Row gather on the MXU.
    out_ref[...] = jnp.dot(onehot, w_ref[...],
                           preferred_element_type=jnp.float32)


def _gather_tiled_kernel(idx_ref, w_ref, out_ref, acc_ref):
    # idx_ref: (TB, 1)  int32
    # w_ref:   (TN, W)  f32 — k-th tile of the weight table (streamed from HBM)
    # out_ref: (TB, W)  f32 — same block across k (resident across reduction)
    # acc_ref: (TB, W)  f32 — VMEM scratch accumulator
    k = pl.program_id(1)

    @pl.when(k == 0)
    def _():
        acc_ref[...] = jnp.zeros_like(acc_ref)

    tb = out_ref.shape[0]
    tn = w_ref.shape[0]
    col_ids = k * tn + lax.broadcasted_iota(jnp.int32, (tb, tn), 1)    # (TB, TN)
    onehot = jnp.where(idx_ref[...] == col_ids,
                       jnp.float32(1.0), jnp.float32(0.0))             # (TB, TN)
    acc_ref[...] += jnp.dot(onehot, w_ref[...],
                            preferred_element_type=jnp.float32)

    @pl.when(k == pl.num_programs(1) - 1)
    def _():
        out_ref[...] = acc_ref[...]


# ---------------------------------------------------------------------------
# Wrapper
# ---------------------------------------------------------------------------

def ordered_embedding_lookup(idx, r, E, l, h, *, force_tiled=False, tile_n=None):
    """Pallas forward of OrderedEmbedding: (E + r*l + (1-r)*h)[idx]."""
    N, W = E.shape

    # Hoisted combine: one O(N*W) op, paid once for N rows instead of once per
    # B lookups inside the kernel.
    r_col = r.reshape(-1, 1).astype(jnp.float32)
    weight = (E.astype(jnp.float32)
              + r_col * l.reshape(1, W).astype(jnp.float32)
              + (1.0 - r_col) * h.reshape(1, W).astype(jnp.float32))

    # Clamp indices so a bad index cannot drive an OOB gather (PyTorch would
    # raise; here we clamp for safety).
    idx_flat = jnp.clip(idx.reshape(-1).astype(jnp.int32), 0, N - 1)
    B = idx_flat.shape[0]

    # Chunk size: sublane-dense, up to 256 lookups per grid step (fills the
    # 2x256 MXU on v6e/v7x, amortizes per-step pipeline overhead).
    TB = 256 if B >= 256 else _round_up(B, 8)
    B_pad = _round_up(B, TB)
    num_chunks = B_pad // TB

    budget = _vmem_budget_bytes()
    n_pad8 = _round_up(N, 8)

    # Resident-path footprint: table (assume double-buffered), onehot (f32) +
    # iota (i32) intermediates, double-buffered out blocks, lane-padded idx.
    resident_bytes = (2 * n_pad8 * W * 4       # weight table (x2 buffers)
                      + TB * n_pad8 * 8        # onehot + iota
                      + 2 * TB * W * 4         # out blocks (x2)
                      + 2 * TB * 128 * 4)      # idx blocks (x2, lane-padded)
    use_tiled = force_tiled or resident_bytes > budget

    idx_col = jnp.zeros((B_pad, 1), jnp.int32).at[:B, 0].set(idx_flat)

    if not use_tiled:
        # -------- Fast path: weight table resident in VMEM ------------------
        N_pad = n_pad8
        w_pad = jnp.zeros((N_pad, W), jnp.float32).at[:N].set(weight)

        grid_spec = pltpu.PrefetchScalarGridSpec(
            num_scalar_prefetch=0,
            grid=(num_chunks,),
            in_specs=[
                pl.BlockSpec((TB, 1), lambda c: (c, 0)),       # idx chunk
                pl.BlockSpec((N_pad, W), lambda c: (0, 0)),    # table, DMA'd once
            ],
            out_specs=pl.BlockSpec((TB, W), lambda c: (c, 0)),
        )
        out = pl.pallas_call(
            _gather_resident_kernel,
            out_shape=jax.ShapeDtypeStruct((B_pad, W), jnp.float32),
            grid_spec=grid_spec,
            compiler_params=pltpu.CompilerParams(
                dimension_semantics=("parallel",),
                vmem_limit_bytes=budget,
            ),
        )(idx_col, w_pad)
    else:
        # -------- Large-table path: N-tiled reduction over weight tiles -----
        if tile_n is None:
            tile_n = _pick_tn(n_pad8, TB, W, budget)
        TN = max(8, _round_up(min(int(tile_n), n_pad8), 8))
        N_pad = _round_up(N, TN)
        num_ntiles = N_pad // TN
        w_pad = jnp.zeros((N_pad, W), jnp.float32).at[:N].set(weight)

        grid_spec = pltpu.PrefetchScalarGridSpec(
            num_scalar_prefetch=0,
            grid=(num_chunks, num_ntiles),
            in_specs=[
                pl.BlockSpec((TB, 1), lambda c, k: (c, 0)),    # idx chunk
                pl.BlockSpec((TN, W), lambda c, k: (k, 0)),    # streamed table tile
            ],
            out_specs=pl.BlockSpec((TB, W), lambda c, k: (c, 0)),
            scratch_shapes=[pltpu.VMEM((TB, W), jnp.float32)],
        )
        out = pl.pallas_call(
            _gather_tiled_kernel,
            out_shape=jax.ShapeDtypeStruct((B_pad, W), jnp.float32),
            grid_spec=grid_spec,
            compiler_params=pltpu.CompilerParams(
                dimension_semantics=("parallel", "arbitrary"),
                vmem_limit_bytes=budget,
            ),
        )(idx_col, w_pad)

    return out[:B].reshape(idx.shape + (W,))


def make_ordered_embedding_params(occ, width, key):
    """Deterministic parameter construction mirroring OrderedEmbedding.__init__."""
    occ = jnp.asarray(occ, dtype=jnp.float32)
    rng = jnp.max(occ) - jnp.min(occ)
    rng = jnp.where(rng == 0.0, 1.0, rng)   # guard degenerate occ (PyTorch would NaN)
    r = ((occ - jnp.min(occ)) / rng).reshape(-1, 1)
    E = jnp.zeros((occ.shape[0], width), dtype=jnp.float32)
    kl, kh = jax.random.split(key)
    l = 0.05 * jax.random.normal(kl, (width,), dtype=jnp.float32)  # Normal(0, 0.05)
    h = 0.05 * jax.random.normal(kh, (width,), dtype=jnp.float32)
    return r, E, l, h


if __name__ == "__main__":
    key = jax.random.PRNGKey(0)
    k_params, k_idx, k_E = jax.random.split(key, 3)

    N = 16            # number of embedding entries (len(occ))
    width = 128       # embedding width (lane dim)
    idx_shape = (6, 100)   # 600 lookups -> TB=256, 3 chunks (exercises padding)

    # Synthetic "occ" values (e.g. orbital occupancies), deterministic.
    occ = jnp.linspace(0.5, 7.5, N)

    r, E, l, h = make_ordered_embedding_params(occ, width, k_params)
    # Make E non-trivial so the gather is actually exercised (the module
    # initializes it to zeros, but it is a learnable Parameter).
    E = 0.01 * jax.random.normal(k_E, (N, width), dtype=jnp.float32)

    idx = jax.random.randint(k_idx, idx_shape, 0, N, dtype=jnp.int32)

    # Pure-JAX reference: weight = E + r*l + (1-r)*h ; out = weight[idx]
    weight_ref = E + r * l[None, :] + (1.0 - r) * h[None, :]
    ref = weight_ref[idx]

    # Fast (resident-table) path.
    out = jax.block_until_ready(ordered_embedding_lookup(idx, r, E, l, h))
    assert out.shape == idx_shape + (width,), out.shape
    assert jnp.allclose(out, ref, atol=1e-5, rtol=1e-5), "resident path mismatch"

    # Large-table (N-tiled reduction) path, forced with a tiny tile to test it.
    out_t = jax.block_until_ready(
        ordered_embedding_lookup(idx, r, E, l, h, force_tiled=True, tile_n=8))
    assert out_t.shape == idx_shape + (width,), out_t.shape
    assert jnp.allclose(out_t, ref, atol=1e-5, rtol=1e-5), "tiled path mismatch"

    print("KERNEL_OK")
</pallas_src>

<mosaic_0001>
module attributes {stable_mosaic.version = 11 : i64} {
  func.func @_gather_resident_kernel(%arg0: i32, %arg1: memref<256x1xi32, #tpu.memory_space<vmem>>, %arg2: memref<16x128xf32, #tpu.memory_space<vmem>>, %arg3: memref<256x128xf32, #tpu.memory_space<vmem>>) attributes {dimension_semantics = [#tpu.dimension_semantics<parallel>], iteration_bounds = array<i64: 3>, scalar_prefetch = 0 : i64, scratch_operands = 0 : i64, tpu.core_type = #tpu.core_type<tc>, window_params = [{transform_indices = @transform_0, window_bounds = array<i64: 256, 1>}, {pipeline_mode = #tpu.pipeline_mode<synchronous>, transform_indices = @transform_1, window_bounds = array<i64: 16, 128>}, {transform_indices = @transform_2, window_bounds = array<i64: 256, 128>}]} {
    %0 = tpu.iota {dimensions = array<i32: 1>} : vector<256x16xi32>
    %c0 = arith.constant 0 : index
    %c0_0 = arith.constant 0 : index
    %1 = vector.load %arg1[%c0, %c0_0] : memref<256x1xi32, #tpu.memory_space<vmem>>, vector<256x1xi32>
    %2 = vector.broadcast %1 : vector<256x1xi32> to vector<256x16xi32>
    %3 = arith.cmpi eq, %2, %0 : vector<256x16xi32>
    %cst = arith.constant 1.000000e+00 : f32
    %cst_1 = arith.constant 0.000000e+00 : f32
    %4 = vector.broadcast %cst : f32 to vector<256x16xf32>
    %5 = vector.broadcast %cst_1 : f32 to vector<256x16xf32>
    %6 = arith.select %3, %4, %5 : vector<256x16xi1>, vector<256x16xf32>
    %c0_2 = arith.constant 0 : index
    %c0_3 = arith.constant 0 : index
    %7 = vector.load %arg2[%c0_2, %c0_3] : memref<16x128xf32, #tpu.memory_space<vmem>>, vector<16x128xf32>
    %cst_4 = arith.constant dense<0.000000e+00> : vector<256x128xf32>
    %8 = tpu.matmul %6, %7, %cst_4 {dimension_numbers = #tpu.dot_dimension_numbers<[1], [0], [0], [1], [0, 0, 1, 1], [], []>} : vector<256x16xf32>, vector<16x128xf32>, vector<256x128xf32> -> vector<256x128xf32>
    %c0_5 = arith.constant 0 : index
    %c0_6 = arith.constant 0 : index
    %9 = vector.load %arg3[%c0_5, %c0_6] : memref<256x128xf32, #tpu.memory_space<vmem>>, vector<256x128xf32>
    tpu.vector_store %arg3[%c0_5, %c0_6], %8 {strides = array<i32>} : memref<256x128xf32, #tpu.memory_space<vmem>>, vector<256x128xf32>,
    return
  }
  func.func @transform_0(%arg0: i32) -> (i32, i32) {
    %c0_i32 = arith.constant 0 : i32
    %c0_i32_0 = arith.constant 0 : i32
    return %arg0, %c0_i32 : i32, i32
  }
  func.func @transform_1(%arg0: i32) -> (i32, i32) {
    %c0_i32 = arith.constant 0 : i32
    %c0_i32_0 = arith.constant 0 : i32
    %c0_i32_1 = arith.constant 0 : i32
    return %c0_i32, %c0_i32_0 : i32, i32
  }
  func.func @transform_2(%arg0: i32) -> (i32, i32) {
    %c0_i32 = arith.constant 0 : i32
    %c0_i32_0 = arith.constant 0 : i32
    return %arg0, %c0_i32 : i32, i32
  }
}

</mosaic_0001>

<bundles_post_ra>
// kernel: tpu_custom_call.1
= control target key start
LH: loop header
LB: loop body
LE: loop exit
PB: predicated region body
PF: predicated region fallthrough
CT: control target
= control target key end

     0   :  { %7 = vsyncpa [#allocation3], 0  ;;  %s1316_s0 = inlined_call_operand.vmem [shape: s32[768,1], index: 0, kind: input, shape index: {}]   ;;  %s1317_s1 = inlined_call_operand.vmem [shape: f32[16,128], index: 1, kind: input, shape index: {}]   ;;  %s1318_s2 = inlined_call_operand.hbm [shape: f32[768,128], index: 2, kind: output, shape index: {}]  }
   0x1   :  { %9 = vsyncpa [#allocation3 + $0x1], 0  ;;  %s1037_s9 = smov 0   ;;  %s1039_s10 = smov 0  }
   0x2   :  { %s1041_s11 = smov 0   ;;  %s1043_s12 = smov 0  }
   0x3 LB: > { %s1058_s13 = sadd.s32 4294967295, %s1015_s12   ;;  %s771_s14 = sadd.s32 4294967294, %s1015_s12   ;;  %s1015_s12 = sphi %s1043_s12, %s1324_s12   ;;  %s1011_s11 = sphi %s1041_s11, %s1323_s11   ;;  %s1007_s10 = sphi %s1039_s10, %s1322_s10   ;;  %s1003_s9 = sphi %s1037_s9, %s1321_s9  }
   0x4   : > { %s1062_s15 = sadd.s32 1, %s1015_s12   ;;  %s69_s16 = sadd.s32 1, %s1011_s11 }
   0x5   : > { %s66_s17 = ssub.s32 %s1015_s12, %s1062_s15  ;;  %p79_p0 = scmp.ne.s32.totalorder %s1011_s11, %s1007_s10 }
   0x6   : > { %p67_p1 = scmp.eq.s32.totalorder %s66_s17, 0  ;;  %p80_p2 = scmp.eq.s32.totalorder %s1058_s13, 2 }
   0x7   : > { %p85_p3 = scmp.ne.s32.totalorder %s1007_s10, %s1003_s9  ;;  %p86_p4 = scmp.eq.s32.totalorder %s771_s14, 2 }
   0x8   : > { %s1073_s18 = scalar_select %p67_p1, %s1011_s11, %s69_s16  }
   0x9   : > { %p1075_p5 = por %p80_p2, %p79_p0  ;;  %p1079_p6 = por %p86_p4, %p85_p3 }
   0xa   : > { %p774_p7 = scmp.ge.s32.totalorder %s1015_s12, 1  ;;  %p116_p8 = scmp.lt.s32.totalorder %s1015_s12, 4 }
   0xc   : > { %p117_p9 = pnand %p774_p7, %p116_p8 }
   0xd   : > { %s776_s21 = sshll.u32 (!%p117_p9), %s1058_s13, 5  ;;  %v339_v0 = vld [vmem:[%s1317_s1] sm:$0xff] (!%p117_p9)  ;;  %v340_v1 = vld [vmem:[%s1317_s1 + $0x8] sm:$0xff] (!%p117_p9)  ;;  %v1017_v2 = vmov (!%p117_p9), 0   ;;  %v145_v36 = vlaneseq (!%p117_p9)  ;;  %vm341_vm0 = vcmask (!%p117_p9), 130048   ;;  %v1018_v40 = vmov (!%p117_p9), 0.0  }
   0xe   : > { %120 = sbr.rel (%p117_p9) target bundleno = 443 (0x1bb), region = 28  ;;  %952 = vset.pattern.permute.xlu1 (!%p117_p9), %v1017_v2  ;;  %951 = vset.pattern.permute.xlu0 (!%p117_p9), %v1017_v2  ;;  %p139_p10 = scmp.lt.s32.totalorder (!%p117_p9), %s776_s21, 95  ;;  %v902_v3 = vpack.c.bf16 (!%p117_p9), %v340_v1, %v339_v0 }
   0xf   : > { %v1129_v37 = vand.u32 (!%p117_p9), 127, %v145_v36  ;;  %s135_s30 = sand.u32 (!%p117_p9), 1, %s1007_s10   ;;  %s815_s5 = sshll.u32 (!%p117_p9), %s1058_s13, 12 }
  0x10   : > { %903 = vmatprep.subr.bf16.mxu0 (!%p117_p9), %v902_v3  ;;  %906 = vmatprep.subr.bf16.mxu1 (!%p117_p9), %v902_v3  ;;  %s775_s3 = sshll.u32 (!%p117_p9), %s135_s30, 8  ;;  %s1265_s14 = scalar_lea.hbm (!%p117_p9), %s1318_s2, %s815_s5 }
  0x11   : > { %905 = vmatpush3.bf16.msra.mxu0 (!%p117_p9), %v902_v3  ;;  %907 = vmatpush3.bf16.msra.mxu1 (!%p117_p9), %v902_v3  ;;  %s1230_s4 = scalar_lea.vmem (!%p117_p9), [#allocation2], %s775_s3  ;;  %s1275_s13 = scalar_lea.sflag (!%p117_p9), [#allocation3], %s135_s30 }
  0x12   : > { %s709_s6 = sshll.u32 (!%p117_p9), %s1230_s4, 4  ;;  %s1019_s17 = smov (!%p117_p9), [#allocation2]   ;;  %s1267_s6 = int_to_ptr.vmem [resolvable:$true] %s709_s6 }
  0x13   : > { %s953_s16 = scalar_lea.vmem (!%p117_p9), %s1267_s6, 4096 }
  0x14   : > { %p954_p11 = scmp.ne.s32.totalorder (!%p117_p9), %s1267_s6, %s953_s16 }
  0x15   : > { %s1326_s21 = smov (!%p139_p10, %s776_s21), 95 }
  0x16   : > { %s777_s26 = sshll.u32 %s1326_s21, 3  ;;  %p955_p12 = pnand %p954_p11, %p1075_p5 }
  0x17   : > { %s1095_s29 = scalar_lea.vmem %s1316_s0, %s777_s26  ;;  %s957_s21 = sshll.u32 %s1019_s17, 4  ;;  %s958_s21 = int_to_ptr.vmem [resolvable:$false] %s957_s21 }
  0x18   : > { %v148_v4 = vld [vmem:[%s1095_s29 + $0x8] sm:$0xff]  ;;  %v147_v5 = vld [vmem:[%s1095_s29] sm:$0xff]  ;;  %v165_v8 = vld [vmem:[%s1095_s29 + $0x90] sm:$0xff]  ;;  %p956_p13 = pneg %p955_p12  ;;  %s959_s22 = scalar_lea.vmem %s958_s21, 8192 }
  0x19   : > { %183 = vperm.xlu1 %952, %v148_v4   ;;  %180 = vperm.xlu0 %951, %v147_v5   ;;  %v164_v6 = vld [vmem:[%s1095_s29 + $0x88] sm:$0xff]  ;;  %v163_v7 = vld [vmem:[%s1095_s29 + $0x80] sm:$0xff]  ;;  %v149_v9 = vld [vmem:[%s1095_s29 + $0x10] sm:$0xff]  ;;  %p960_p0 = scmp.lt.s32.totalorder %s1267_s6, %s958_s21  ;;  %p961_p1 = scmp.lt.s32.totalorder %s959_s22, %s953_s16 }
  0x1a   : > { %v166_v10 = vld [vmem:[%s1095_s29 + $0x98] sm:$0xff]  ;;  %v167_v12 = vld [vmem:[%s1095_s29 + $0xa0] sm:$0xff]  ;;  %v168_v14 = vld [vmem:[%s1095_s29 + $0xa8] sm:$0xff] }
  0x1b   : > { %v150_v11 = vld [vmem:[%s1095_s29 + $0x18] sm:$0xff]  ;;  %v151_v13 = vld [vmem:[%s1095_s29 + $0x20] sm:$0xff]  ;;  %v152_v15 = vld [vmem:[%s1095_s29 + $0x28] sm:$0xff]  ;;  %p962_p2 = por %p961_p1, %p960_p0 }
  0x1c   : > { %v169_v16 = vld [vmem:[%s1095_s29 + $0xb0] sm:$0xff]  ;;  %v170_v18 = vld [vmem:[%s1095_s29 + $0xb8] sm:$0xff]  ;;  %v171_v20 = vld [vmem:[%s1095_s29 + $0xc0] sm:$0xff] }
  0x1d   : > { %231 = vperm.xlu1 %952, %v164_v6   ;;  %228 = vperm.xlu0 %951, %v163_v7   ;;  %v153_v17 = vld [vmem:[%s1095_s29 + $0x30] sm:$0xff]  ;;  %v154_v19 = vld [vmem:[%s1095_s29 + $0x38] sm:$0xff]  ;;  %v155_v21 = vld [vmem:[%s1095_s29 + $0x40] sm:$0xff]  ;;  %p963_p3 = pnand %p962_p2, %p956_p13 }
  0x1e   : > { %v172_v22 = vld [vmem:[%s1095_s29 + $0xc8] sm:$0xff]  ;;  %v173_v24 = vld [vmem:[%s1095_s29 + $0xd0] sm:$0xff]  ;;  %v174_v26 = vld [vmem:[%s1095_s29 + $0xd8] sm:$0xff] }
  0x1f   : > { %v156_v23 = vld [vmem:[%s1095_s29 + $0x48] sm:$0xff]  ;;  %v157_v25 = vld [vmem:[%s1095_s29 + $0x50] sm:$0xff]  ;;  %v158_v27 = vld [vmem:[%s1095_s29 + $0x58] sm:$0xff] }
  0x20   : > { %v175_v28 = vld [vmem:[%s1095_s29 + $0xe0] sm:$0xff]  ;;  %v176_v30 = vld [vmem:[%s1095_s29 + $0xe8] sm:$0xff]  ;;  %v177_v32 = vld [vmem:[%s1095_s29 + $0xf0] sm:$0xff] }
  0x21   : > { %234 = vperm.xlu1 %952, %v165_v8   ;;  %186 = vperm.xlu0 %951, %v149_v9   ;;  %v159_v29 = vld [vmem:[%s1095_s29 + $0x60] sm:$0xff]  ;;  %v160_v31 = vld [vmem:[%s1095_s29 + $0x68] sm:$0xff]  ;;  %v161_v33 = vld [vmem:[%s1095_s29 + $0x70] sm:$0xff] }
  0x22   : > { %v178_v34 = vld [vmem:[%s1095_s29 + $0xf8] sm:$0xff] }
  0x23   : > { %v162_v35 = vld [vmem:[%s1095_s29 + $0x78] sm:$0xff] }
  0x25   : > { %237 = vperm.xlu1 %952, %v166_v10   ;;  %189 = vperm.xlu0 %951, %v150_v11  }
  0x29   : > { %240 = vperm.xlu1 %952, %v167_v12   ;;  %192 = vperm.xlu0 %951, %v151_v13  }
  0x2d   : > { %243 = vperm.xlu1 %952, %v168_v14   ;;  %195 = vperm.xlu0 %951, %v152_v15  }
  0x31   : > { %246 = vperm.xlu1 %952, %v169_v16   ;;  %198 = vperm.xlu0 %951, %v153_v17  }
  0x35   : > { %249 = vperm.xlu1 %952, %v170_v18   ;;  %201 = vperm.xlu0 %951, %v154_v19  }
  0x39   : > { %252 = vperm.xlu1 %952, %v171_v20   ;;  %204 = vperm.xlu0 %951, %v155_v21  }
  0x3d   : > { %255 = vperm.xlu1 %952, %v172_v22   ;;  %207 = vperm.xlu0 %951, %v156_v23  }
  0x41   : > { %258 = vperm.xlu1 %952, %v173_v24   ;;  %210 = vperm.xlu0 %951, %v157_v25  }
  0x45   : > { %261 = vperm.xlu1 %952, %v174_v26   ;;  %213 = vperm.xlu0 %951, %v158_v27  }
  0x49   : > { %264 = vperm.xlu1 %952, %v175_v28   ;;  %216 = vperm.xlu0 %951, %v159_v29  }
  0x4d   : > { %267 = vperm.xlu1 %952, %v176_v30   ;;  %219 = vperm.xlu0 %951, %v160_v31  }
  0x51   : > { %270 = vperm.xlu1 %952, %v177_v32   ;;  %222 = vperm.xlu0 %951, %v161_v33  }
  0x55   : > { %273 = vperm.xlu1 %952, %v178_v34   ;;  %225 = vperm.xlu0 %951, %v162_v35  }
  0x98   : > { %v184_v38 = vpop.permute.xlu1 %183  ;;  %v181_v39 = vpop.permute.xlu0 %180 }
  0x99   : > { %vm276_vm1 = vcmp.eq.s32.totalorder %v184_v38, %v1129_v37  ;;  %vm275_vm2 = vcmp.eq.s32.totalorder %v181_v39, %v1129_v37 }
  0x9a   : > { %v308_v41 = vsel %vm276_vm1, 1.0, %v1018_v40  ;;  %v307_v42 = vsel %vm275_vm2, 1.0, %v1018_v40 }
  0x9b   : > { %854 = vmatprep.mubr.msk.f32.mxu0 %vm341_vm0, %v307_v42 }
  0x9c   : > { %v232_v43 = vpop.permute.xlu1 %231  ;;  %855 = vmatmul.mubr.msk.f32.vlgmr.msra.gmra.mrb[0].mxu0 %vm341_vm0, %v308_v41  ;;  %v229_v44 = vpop.permute.xlu0 %228 }
  0x9d   : > { %vm292_vm3 = vcmp.eq.s32.totalorder %v232_v43, %v1129_v37  ;;  %vm291_vm4 = vcmp.eq.s32.totalorder %v229_v44, %v1129_v37 }
  0x9e   : > { %v324_v45 = vsel %vm292_vm3, 1.0, %v1018_v40  ;;  %v323_v46 = vsel %vm291_vm4, 1.0, %v1018_v40 }
  0x9f   : > { %878 = vmatprep.mubr.msk.f32.mxu1 %vm341_vm0, %v323_v46 }
  0xa0   : > { %v235_v47 = vpop.permute.xlu1 %234  ;;  %879 = vmatmul.mubr.msk.f32.vlgmr.msra.gmra.mrb[0].mxu1 %vm341_vm0, %v324_v45  ;;  %v187_v48 = vpop.permute.xlu0 %186 }
  0xa1   : > { %vm293_vm5 = vcmp.eq.s32.totalorder %v235_v47, %v1129_v37  ;;  %vm277_vm6 = vcmp.eq.s32.totalorder %v187_v48, %v1129_v37 }
  0xa2   : > { %v325_v49 = vsel %vm293_vm5, 1.0, %v1018_v40  ;;  %v309_v50 = vsel %vm277_vm6, 1.0, %v1018_v40 }
  0xa3   : > { %857 = vmatprep.mubr.msk.f32.mxu0 %vm341_vm0, %v309_v50  ;;  %881 = vmatprep.mubr.msk.f32.mxu1 %vm341_vm0, %v325_v49 }
  0xa4   : > { %v238_v51 = vpop.permute.xlu1 %237  ;;  %v190_v52 = vpop.permute.xlu0 %189 }
  0xa5   : > { %vm294_vm7 = vcmp.eq.s32.totalorder %v238_v51, %v1129_v37  ;;  %vm278_vm8 = vcmp.eq.s32.totalorder %v190_v52, %v1129_v37 }
  0xa6   : > { %v326_v53 = vsel %vm294_vm7, 1.0, %v1018_v40  ;;  %v310_v54 = vsel %vm278_vm8, 1.0, %v1018_v40 }
  0xa7   : > { %858 = vmatmul.mubr.msk.f32.gmra.mrb[2].mxu0 %vm341_vm0, %v310_v54  ;;  %882 = vmatmul.mubr.msk.f32.gmra.mrb[2].mxu1 %vm341_vm0, %v326_v53 }
  0xa8   : > { %v241_v55 = vpop.permute.xlu1 %240  ;;  %v193_v56 = vpop.permute.xlu0 %192 }
  0xa9   : > { %vm295_vm9 = vcmp.eq.s32.totalorder %v241_v55, %v1129_v37  ;;  %vm279_vm10 = vcmp.eq.s32.totalorder %v193_v56, %v1129_v37 }
  0xaa   : > { %v327_v57 = vsel %vm295_vm9, 1.0, %v1018_v40  ;;  %v311_v58 = vsel %vm279_vm10, 1.0, %v1018_v40 }
  0xab   : > { %860 = vmatprep.mubr.msk.f32.mxu0 %vm341_vm0, %v311_v58  ;;  %884 = vmatprep.mubr.msk.f32.mxu1 %vm341_vm0, %v327_v57 }
  0xac   : > { %v244_v59 = vpop.permute.xlu1 %243  ;;  %v196_v60 = vpop.permute.xlu0 %195 }
  0xad   : > { %vm296_vm11 = vcmp.eq.s32.totalorder %v244_v59, %v1129_v37  ;;  %vm280_vm12 = vcmp.eq.s32.totalorder %v196_v60, %v1129_v37 }
  0xae   : > { %v328_v61 = vsel %vm296_vm11, 1.0, %v1018_v40  ;;  %v312_v62 = vsel %vm280_vm12, 1.0, %v1018_v40 }
  0xaf   : > { %861 = vmatmul.mubr.msk.f32.gmra.mrb[4].mxu0 %vm341_vm0, %v312_v62  ;;  %885 = vmatmul.mubr.msk.f32.gmra.mrb[4].mxu1 %vm341_vm0, %v328_v61 }
  0xb0   : > { %v247_v63 = vpop.permute.xlu1 %246  ;;  %v199_v0 = vpop.permute.xlu0 %198 }
  0xb1   : > { %vm297_vm13 = vcmp.eq.s32.totalorder %v247_v63, %v1129_v37  ;;  %vm281_vm14 = vcmp.eq.s32.totalorder %v199_v0, %v1129_v37 }
  0xb2   : > { %v329_v1 = vsel %vm297_vm13, 1.0, %v1018_v40  ;;  %v313_v2 = vsel %vm281_vm14, 1.0, %v1018_v40 }
  0xb3   : > { %863 = vmatprep.mubr.msk.f32.mxu0 %vm341_vm0, %v313_v2  ;;  %887 = vmatprep.mubr.msk.f32.mxu1 %vm341_vm0, %v329_v1 }
  0xb4   : > { %v250_v3 = vpop.permute.xlu1 %249  ;;  %v202_v4 = vpop.permute.xlu0 %201 }
  0xb5   : > { %vm298_vm15 = vcmp.eq.s32.totalorder %v250_v3, %v1129_v37  ;;  %vm282_vm1 = vcmp.eq.s32.totalorder %v202_v4, %v1129_v37 }
  0xb6   : > { %v330_v5 = vsel %vm298_vm15, 1.0, %v1018_v40  ;;  %v314_v6 = vsel %vm282_vm1, 1.0, %v1018_v40 }
  0xb7   : > { %864 = vmatmul.mubr.msk.f32.gmra.mrb[6].mxu0 %vm341_vm0, %v314_v6  ;;  %888 = vmatmul.mubr.msk.f32.gmra.mrb[6].mxu1 %vm341_vm0, %v330_v5 }
  0xb8   : > { %v253_v7 = vpop.permute.xlu1 %252  ;;  %v205_v8 = vpop.permute.xlu0 %204 }
  0xb9   : > { %vm299_vm2 = vcmp.eq.s32.totalorder %v253_v7, %v1129_v37  ;;  %vm283_vm3 = vcmp.eq.s32.totalorder %v205_v8, %v1129_v37 }
  0xba   : > { %v331_v9 = vsel %vm299_vm2, 1.0, %v1018_v40  ;;  %v315_v10 = vsel %vm283_vm3, 1.0, %v1018_v40 }
  0xbb   : > { %866 = vmatprep.mubr.msk.f32.mxu0 %vm341_vm0, %v315_v10  ;;  %890 = vmatprep.mubr.msk.f32.mxu1 %vm341_vm0, %v331_v9 }
  0xbc   : > { %v256_v11 = vpop.permute.xlu1 %255  ;;  %v208_v12 = vpop.permute.xlu0 %207 }
  0xbd   : > { %vm300_vm4 = vcmp.eq.s32.totalorder %v256_v11, %v1129_v37  ;;  %vm284_vm5 = vcmp.eq.s32.totalorder %v208_v12, %v1129_v37 }
  0xbe   : > { %v332_v13 = vsel %vm300_vm4, 1.0, %v1018_v40  ;;  %v316_v14 = vsel %vm284_vm5, 1.0, %v1018_v40 }
  0xbf   : > { %867 = vmatmul.mubr.msk.f32.gmra.mrb[8].mxu0 %vm341_vm0, %v316_v14  ;;  %891 = vmatmul.mubr.msk.f32.gmra.mrb[8].mxu1 %vm341_vm0, %v332_v13 }
  0xc0   : > { %v259_v15 = vpop.permute.xlu1 %258  ;;  %v211_v16 = vpop.permute.xlu0 %210 }
  0xc1   : > { %vm301_vm6 = vcmp.eq.s32.totalorder %v259_v15, %v1129_v37  ;;  %vm285_vm7 = vcmp.eq.s32.totalorder %v211_v16, %v1129_v37 }
  0xc2   : > { %v333_v17 = vsel %vm301_vm6, 1.0, %v1018_v40  ;;  %v317_v18 = vsel %vm285_vm7, 1.0, %v1018_v40 }
  0xc3   : > { %869 = vmatprep.mubr.msk.f32.mxu0 %vm341_vm0, %v317_v18  ;;  %893 = vmatprep.mubr.msk.f32.mxu1 %vm341_vm0, %v333_v17 }
  0xc4   : > { %v262_v19 = vpop.permute.xlu1 %261  ;;  %v214_v20 = vpop.permute.xlu0 %213 }
  0xc5   : > { %vm302_vm8 = vcmp.eq.s32.totalorder %v262_v19, %v1129_v37  ;;  %vm286_vm9 = vcmp.eq.s32.totalorder %v214_v20, %v1129_v37 }
  0xc6   : > { %v334_v21 = vsel %vm302_vm8, 1.0, %v1018_v40  ;;  %v318_v22 = vsel %vm286_vm9, 1.0, %v1018_v40 }
  0xc7   : > { %870 = vmatmul.mubr.msk.f32.gmra.mrb[10].mxu0 %vm341_vm0, %v318_v22  ;;  %894 = vmatmul.mubr.msk.f32.gmra.mrb[10].mxu1 %vm341_vm0, %v334_v21 }
  0xc8   : > { %v265_v23 = vpop.permute.xlu1 %264  ;;  %v217_v24 = vpop.permute.xlu0 %216 }
  0xc9   : > { %vm303_vm10 = vcmp.eq.s32.totalorder %v265_v23, %v1129_v37  ;;  %vm287_vm11 = vcmp.eq.s32.totalorder %v217_v24, %v1129_v37 }
  0xca   : > { %v335_v25 = vsel %vm303_vm10, 1.0, %v1018_v40  ;;  %v319_v26 = vsel %vm287_vm11, 1.0, %v1018_v40 }
  0xcb   : > { %872 = vmatprep.mubr.msk.f32.mxu0 %vm341_vm0, %v319_v26  ;;  %896 = vmatprep.mubr.msk.f32.mxu1 %vm341_vm0, %v335_v25 }
  0xcc   : > { %v268_v27 = vpop.permute.xlu1 %267  ;;  %v220_v28 = vpop.permute.xlu0 %219 }
  0xcd   : > { %vm304_vm12 = vcmp.eq.s32.totalorder %v268_v27, %v1129_v37  ;;  %vm288_vm13 = vcmp.eq.s32.totalorder %v220_v28, %v1129_v37 }
  0xce   : > { %v336_v29 = vsel %vm304_vm12, 1.0, %v1018_v40  ;;  %v320_v30 = vsel %vm288_vm13, 1.0, %v1018_v40 }
  0xcf   : > { %873 = vmatmul.mubr.msk.f32.gmra.mrb[12].mxu0 %vm341_vm0, %v320_v30  ;;  %897 = vmatmul.mubr.msk.f32.gmra.mrb[12].mxu1 %vm341_vm0, %v336_v29 }
  0xd0   : > { %v271_v31 = vpop.permute.xlu1 %270  ;;  %v223_v32 = vpop.permute.xlu0 %222 }
  0xd1   : > { %vm305_vm14 = vcmp.eq.s32.totalorder %v271_v31, %v1129_v37  ;;  %vm289_vm15 = vcmp.eq.s32.totalorder %v223_v32, %v1129_v37 }
  0xd2   : > { %v337_v33 = vsel %vm305_vm14, 1.0, %v1018_v40  ;;  %v321_v34 = vsel %vm289_vm15, 1.0, %v1018_v40 }
  0xd3   : > { %875 = vmatprep.mubr.msk.f32.mxu0 %vm341_vm0, %v321_v34  ;;  %899 = vmatprep.mubr.msk.f32.mxu1 %vm341_vm0, %v337_v33 }
  0xd4   : > { %v274_v35 = vpop.permute.xlu1 %273  ;;  %v226_v36 = vpop.permute.xlu0 %225 }
  0xd5   : > { %vm306_vm1 = vcmp.eq.s32.totalorder %v274_v35, %v1129_v37  ;;  %vm290_vm2 = vcmp.eq.s32.totalorder %v226_v36, %v1129_v37 }
  0xd6   : > { %v338_v38 = vsel %vm306_vm1, 1.0, %v1018_v40  ;;  %v322_v39 = vsel %vm290_vm2, 1.0, %v1018_v40 }
  0xd7   : > { %876 = vmatmul.mubr.msk.f32.gmra.mrb[14].mxu0 %vm341_vm0, %v322_v39  ;;  %900 = vmatmul.mubr.msk.f32.gmra.mrb[14].mxu1 %vm341_vm0, %v338_v38 }
 0x16f   : > { %v856_v41 = vpop.f32.mrb[0].mxu0 }
 0x170   : > { %664 = vst [vmem:[%s1230_s4 + $0x8] sm:$0xff] %v856_v41  ;;  %v504_v37 = vpop.f32.mrb[1].mxu0 }
 0x171   : > { %663 = vst [vmem:[%s1230_s4] sm:$0xff] %v504_v37 }
 0x173   : > { %v880_v40 = vpop.f32.mrb[0].mxu1 }
 0x174   : > { %680 = vst [vmem:[%s1230_s4 + $0x88] sm:$0xff] %v880_v40  ;;  %v584_v42 = vpop.f32.mrb[1].mxu1 }
 0x175   : > { %679 = vst [vmem:[%s1230_s4 + $0x80] sm:$0xff] %v584_v42 }
 0x17a   : > { %v859_v43 = vpop.f32.mrb[2].mxu0  ;;  %v883_v44 = vpop.f32.mrb[2].mxu1 }
 0x17b   : > { %666 = vst [vmem:[%s1230_s4 + $0x18] sm:$0xff] %v859_v43  ;;  %682 = vst [vmem:[%s1230_s4 + $0x98] sm:$0xff] %v883_v44  ;;  %v514_v45 = vpop.f32.mrb[3].mxu0  ;;  %v594_v46 = vpop.f32.mrb[3].mxu1 }
 0x17c   : > { %665 = vst [vmem:[%s1230_s4 + $0x10] sm:$0xff] %v514_v45  ;;  %681 = vst [vmem:[%s1230_s4 + $0x90] sm:$0xff] %v594_v46 }
 0x182   : > { %v862_v47 = vpop.f32.mrb[4].mxu0  ;;  %v886_v48 = vpop.f32.mrb[4].mxu1 }
 0x183   : > { %668 = vst [vmem:[%s1230_s4 + $0x28] sm:$0xff] %v862_v47  ;;  %684 = vst [vmem:[%s1230_s4 + $0xa8] sm:$0xff] %v886_v48  ;;  %v524_v49 = vpop.f32.mrb[5].mxu0  ;;  %v604_v50 = vpop.f32.mrb[5].mxu1 }
 0x184   : > { %667 = vst [vmem:[%s1230_s4 + $0x20] sm:$0xff] %v524_v49  ;;  %683 = vst [vmem:[%s1230_s4 + $0xa0] sm:$0xff] %v604_v50 }
 0x18a   : > { %v865_v51 = vpop.f32.mrb[6].mxu0  ;;  %v889_v52 = vpop.f32.mrb[6].mxu1 }
 0x18b   : > { %670 = vst [vmem:[%s1230_s4 + $0x38] sm:$0xff] %v865_v51  ;;  %686 = vst [vmem:[%s1230_s4 + $0xb8] sm:$0xff] %v889_v52  ;;  %v534_v53 = vpop.f32.mrb[7].mxu0  ;;  %v614_v54 = vpop.f32.mrb[7].mxu1 }
 0x18c   : > { %669 = vst [vmem:[%s1230_s4 + $0x30] sm:$0xff] %v534_v53  ;;  %685 = vst [vmem:[%s1230_s4 + $0xb0] sm:$0xff] %v614_v54 }
 0x192   : > { %v868_v55 = vpop.f32.mrb[8].mxu0  ;;  %v892_v56 = vpop.f32.mrb[8].mxu1 }
 0x193   : > { %672 = vst [vmem:[%s1230_s4 + $0x48] sm:$0xff] %v868_v55  ;;  %688 = vst [vmem:[%s1230_s4 + $0xc8] sm:$0xff] %v892_v56  ;;  %v544_v57 = vpop.f32.mrb[9].mxu0  ;;  %v624_v58 = vpop.f32.mrb[9].mxu1 }
 0x194   : > { %671 = vst [vmem:[%s1230_s4 + $0x40] sm:$0xff] %v544_v57  ;;  %687 = vst [vmem:[%s1230_s4 + $0xc0] sm:$0xff] %v624_v58 }
 0x19a   : > { %v871_v59 = vpop.f32.mrb[10].mxu0  ;;  %v895_v60 = vpop.f32.mrb[10].mxu1 }
 0x19b   : > { %674 = vst [vmem:[%s1230_s4 + $0x58] sm:$0xff] %v871_v59  ;;  %690 = vst [vmem:[%s1230_s4 + $0xd8] sm:$0xff] %v895_v60  ;;  %v554_v61 = vpop.f32.mrb[11].mxu0  ;;  %v634_v62 = vpop.f32.mrb[11].mxu1 }
 0x19c   : > { %673 = vst [vmem:[%s1230_s4 + $0x50] sm:$0xff] %v554_v61  ;;  %689 = vst [vmem:[%s1230_s4 + $0xd0] sm:$0xff] %v634_v62 }
 0x1a2   : > { %v874_v63 = vpop.f32.mrb[12].mxu0  ;;  %v898_v0 = vpop.f32.mrb[12].mxu1 }
 0x1a3   : > { %676 = vst [vmem:[%s1230_s4 + $0x68] sm:$0xff] %v874_v63  ;;  %692 = vst [vmem:[%s1230_s4 + $0xe8] sm:$0xff] %v898_v0  ;;  %v564_v1 = vpop.f32.mrb[13].mxu0  ;;  %v644_v2 = vpop.f32.mrb[13].mxu1 }
 0x1a4   : > { %675 = vst [vmem:[%s1230_s4 + $0x60] sm:$0xff] %v564_v1  ;;  %691 = vst [vmem:[%s1230_s4 + $0xe0] sm:$0xff] %v644_v2 }
 0x1aa   : > { %v877_v3 = vpop.f32.mrb[14].mxu0  ;;  %v901_v4 = vpop.f32.mrb[14].mxu1 }
 0x1ab   : > { %678 = vst [vmem:[%s1230_s4 + $0x78] sm:$0xff] %v877_v3  ;;  %694 = vst [vmem:[%s1230_s4 + $0xf8] sm:$0xff] %v901_v4  ;;  %v574_v5 = vpop.f32.mrb[15].mxu0  ;;  %v654_v6 = vpop.f32.mrb[15].mxu1 }
 0x1ac   : > { %677 = vst [vmem:[%s1230_s4 + $0x70] sm:$0xff] %v574_v5  ;;  %693 = vst [vmem:[%s1230_s4 + $0xf0] sm:$0xff] %v654_v6 }
 0x1ad   : > { %966 = shalt.err (!%p963_p3)
}
 0x1ae   : > { %s967_s23 = scalar_lea.hbm %s1265_s14, 4096  ;;  %s971_s26 = scalar_lea.hbm %s1318_s2, 12288 }
 0x1af   : > { %p968_p4 = scmp.ne.s32.totalorder %s1265_s14, %s967_s23  ;;  %p972_p9 = scmp.lt.u32.totalorder %s1265_s14, %s1318_s2 }
 0x1b0   : > { %p973_p10 = scmp.lt.u32.totalorder %s971_s26, %s967_s23  ;;  %p975_p12 = scmp.lt.u32.totalorder %s967_s23, %s1265_s14 }
 0x1b1   : > { %p969_p7 = pnand %p968_p4, %p1075_p5 }
 0x1b2   : > { %p974_p11 = por %p973_p10, %p972_p9 }
 0x1b3   : > { %p970_p8 = pneg %p969_p7 }
 0x1b4   : > { %p976_p13 = por %p975_p12, %p974_p11 }
 0x1b6   : > { %p977_p0 = pnand %p976_p13, %p970_p8 }
 0x1b8   : > { %980 = shalt.err (!%p977_p0)
}
 0x1b9   : > { %s1020_s29 = smov 128   ;;  %s1021_s30 = smov 8  }
 0x1ba   : > { %908 = dma.vmem_to_hbm [thread:$0]  (%p1075_p5), %s1267_s6, 4096, %s1265_s14, %s1275_s13, %s1020_s29, %s1020_s29, %s1021_s30  }
 0x1bb PF: > { %p914_p1 = scmp.ge.s32.totalorder %s1015_s12, 2  ;;  %s724_s3 = sand.u32 1, %s1003_s9  }
 0x1bc   : > { %s725_s4 = scalar_lea.sflag [#allocation3], %s724_s3 }
 0x1bd   : > { %p911_p2 = pnand %p914_p1, %p1079_p6 }
 0x1bf   : > { %998 = dma.done.wait (!%p911_p2), %s725_s4, 4096  }
 0x1c0   : > { %1000 = vsyncadd (!%p911_p2), %s725_s4, 4294963200  ;;  %p12_p3 = scmp.ge.s32.totalorder %s1062_s15, 5   ;;  %s1321_s9 = smov %s1007_s10 }
 0x1c1   : > { %s1322_s10 = smov %s1011_s11  ;;  %s1323_s11 = smov %s1073_s18 }
 0x1c2   : > { %s1324_s12 = smov %s1062_s15  ;;  %14 = sbr.rel (!%p12_p3) target bundleno = 3 (0x3), region = 63 }
 0x1c9   :  { %730 = vsyncpa [#allocation3], 1 }
 0x1ca   :  { %732 = vsyncpa [#allocation3 + $0x1], 1 }

</bundles_post_ra>
